<compile_context>
chip_gen: v6e
topology: v6e:2x2x1
jax: 0.10.0
libtpu: 0.0.40
codegen_flags: <defaults>
</compile_context>

<pallas_src>
import jax
import jax.numpy as jnp
from jax import lax
from jax.experimental import pallas as pl
from jax.experimental.pallas import tpu as pltpu

# ----- model dims (small, consistent with the forward pass) -----
BATCH = 2
TEXT_LEN = 8                 # T
INPUT_EMBEDDING_DIM = 32     # D (BERT hidden size stand-in)
GCN_OUTPUT_DIM = 16          # G
CLASS_NUM = 4                # C
AGENT_NUM = 5                # agent tokens in Medical_Attention
VOCAB = 64

# ----- packed parameter slab layout (rows start at 8-row boundaries) -----
_LANE = 128
_B1_R0 = 0                                   # b1    (A, T)
_B2_R0 = 8                                   # b2    (T, A)
_WGCN_R0 = 16                                # w_gcn (D, G)
_BGCN_R0 = 48                                # b_gcn (1, G)
_WCLS_R0 = 56                                # w_cls (G+D, C): rows 56..71 = pool part,
_WCLS_D_R0 = _WCLS_R0 + GCN_OUTPUT_DIM       #                 rows 72..103 = sentence part
_BCLS_R0 = 104                               # b_cls (1, C)
_SLAB_ROWS = 112


def total_model_kernel(words_ref, mask_ref, sent_ref, slab_ref, out_ref):
    A, T, D, G, C = AGENT_NUM, TEXT_LEN, INPUT_EMBEDDING_DIM, GCN_OUTPUT_DIM, CLASS_NUM

    words = words_ref[...]                                   # (B, T, D)
    m = mask_ref[...]                                        # (B, T, 1)
    sent = sent_ref[...]                                     # (B, D)

    # static slices into the packed parameter slab (single DMA'd input)
    b1 = slab_ref[_B1_R0:_B1_R0 + A, 0:T]                    # (A, T)
    b2 = slab_ref[_B2_R0:_B2_R0 + T, 0:A]                    # (T, A)
    w_gcn = slab_ref[_WGCN_R0:_WGCN_R0 + D, 0:G]             # (D, G)
    b_gcn = slab_ref[_BGCN_R0:_BGCN_R0 + 1, 0:G]             # (1, G)
    w_cls_g = slab_ref[_WCLS_R0:_WCLS_R0 + G, 0:C]           # (G, C)  pool part
    w_cls_d = slab_ref[_WCLS_D_R0:_WCLS_D_R0 + D, 0:C]       # (D, C)  sentence part
    b_cls = slab_ref[_BCLS_R0:_BCLS_R0 + 1, 0:C]             # (1, C)

    # ---------------- Medical_Attention (agent attention) ----------------
    # mask_q[medical_term_mask == 0] = 0 ; agent_token = mean over T
    mask_q = jnp.where(m == 0.0, 0.0, words)                 # (B, T, D)
    agent_token = jnp.mean(mask_q, axis=1, keepdims=True)    # (B, 1, D)

    # agent_token_multi has identical rows -> one dot per token, broadcast over A.
    base = jnp.sum(agent_token * words, axis=-1)             # (B, T)

    # agent_attn = softmax(agent_token_multi @ k^T + b1) over T
    s_a = base[:, None, :] + b1[None, :, :]                  # (B, A, T)
    s_a = s_a - jnp.max(s_a, axis=-1, keepdims=True)
    p_a = jnp.exp(s_a)
    agent_attn = p_a * pl.reciprocal(
        jnp.sum(p_a, axis=-1, keepdims=True), approx=True)   # (B, A, T)
    agent_v = jnp.einsum('bat,btd->bad', agent_attn, words,
                         preferred_element_type=jnp.float32)  # (B, A, D)

    # q_attn = softmax(q @ agent_token_multi^T + b2) over A
    s_q = base[:, :, None] + b2[None, :, :]                  # (B, T, A)
    s_q = s_q - jnp.max(s_q, axis=-1, keepdims=True)
    p_q = jnp.exp(s_q)
    q_attn = p_q * pl.reciprocal(
        jnp.sum(p_q, axis=-1, keepdims=True), approx=True)   # (B, T, A)

    # ---- cosine adjacency column-sums folded into the mean-pool weights ----
    # adj[t,s] = qn[t].qn[s]  =>  colsum(adj)[s] = qn[s] . sum_t qn[t]
    norm_sq = jnp.sum(words * words, axis=-1, keepdims=True)
    qn = words * lax.rsqrt(jnp.maximum(norm_sq, 1e-16))      # (B, T, D)
    qsum = jnp.sum(qn, axis=1)                               # (B, D)
    colsum = jnp.sum(qn * qsum[:, None, :], axis=-1)         # (B, T)

    # mean_t(adj @ ((q_attn @ agent_v) @ Wg) + bg)
    #   = ((colsum/T) @ q_attn) @ agent_v @ Wg + bg
    wt = colsum * (1.0 / T)                                  # (B, T)
    c = jnp.sum(wt[:, :, None] * q_attn, axis=1)             # (B, A)
    pooled = jnp.sum(c[:, :, None] * agent_v, axis=1)        # (B, D)
    pool_g = jnp.dot(pooled, w_gcn,
                     preferred_element_type=jnp.float32) + b_gcn   # (B, G)

    # ---------------- Classifier on concat([pool, sentence]) ----------------
    logits = (jnp.dot(pool_g, w_cls_g, preferred_element_type=jnp.float32)
              + jnp.dot(sent, w_cls_d, preferred_element_type=jnp.float32)
              + b_cls)                                       # (B, C)
    out_ref[...] = logits


def pack_param_slab(params):
    A, T, D, G, C = AGENT_NUM, TEXT_LEN, INPUT_EMBEDDING_DIM, GCN_OUTPUT_DIM, CLASS_NUM
    slab = jnp.zeros((_SLAB_ROWS, _LANE), jnp.float32)
    slab = slab.at[_B1_R0:_B1_R0 + A, 0:T].set(params["b1"])
    slab = slab.at[_B2_R0:_B2_R0 + T, 0:A].set(params["b2"])
    slab = slab.at[_WGCN_R0:_WGCN_R0 + D, 0:G].set(params["w_gcn"])
    slab = slab.at[_BGCN_R0:_BGCN_R0 + 1, 0:G].set(params["b_gcn"])
    slab = slab.at[_WCLS_R0:_WCLS_R0 + (G + D), 0:C].set(params["w_cls"])
    slab = slab.at[_BCLS_R0:_BCLS_R0 + 1, 0:C].set(params["b_cls"])
    return slab


def total_model_forward(words_feature, medical_term_mask, sentence_feature, param_slab):
    B, T, D = words_feature.shape
    A, G, C = AGENT_NUM, GCN_OUTPUT_DIM, CLASS_NUM
    mask3 = medical_term_mask.astype(jnp.float32).reshape(B, T, 1)

    flops = int(2 * B * (T * D            # base dot
                         + A * T * D      # agent_v
                         + 2 * T * D      # cosine norm + colsum
                         + T * A          # pooled attention weights
                         + A * D          # pooled features
                         + D * G          # GCN weight
                         + (G + D) * C))  # classifier
    transcendentals = int(B * (2 * A * T + 2 * T + A))
    bytes_accessed = int(4 * (B * T * D + B * T + B * D
                              + _SLAB_ROWS * _LANE + B * C))

    vmem = pl.BlockSpec(memory_space=pltpu.MemorySpace.VMEM)
    out = pl.pallas_call(
        total_model_kernel,
        out_shape=jax.ShapeDtypeStruct((B, CLASS_NUM), jnp.float32),
        in_specs=[vmem, vmem, vmem, vmem],
        out_specs=vmem,
        cost_estimate=pl.CostEstimate(flops=flops,
                                      transcendentals=transcendentals,
                                      bytes_accessed=bytes_accessed),
    )(words_feature, mask3, sentence_feature, param_slab)
    return out


def feature_extractor_stub(input_ids, attention_mask, emb_table, w_pooler):
    # TODO(synk): pretrained BertModel has no Pallas equivalent; replaced with a
    # deterministic frozen embedding lookup + tanh pooler producing
    # (last_hidden_state, pooler_output) with matching shapes/dtypes.
    words = jnp.take(emb_table, input_ids, axis=0)
    words = words * attention_mask[..., None].astype(jnp.float32)            # (B, T, D)
    sentence = jnp.tanh(words[:, 0, :] @ w_pooler)                           # (B, D)
    return words, sentence


def init_params(key):
    ks = jax.random.split(key, 8)
    D, G, C, T, A = INPUT_EMBEDDING_DIM, GCN_OUTPUT_DIM, CLASS_NUM, TEXT_LEN, AGENT_NUM
    # trunc_normal_(std=0.02) biases of Medical_Attention (approximated by normal)
    b1 = 0.02 * jax.random.normal(ks[0], (A, T), jnp.float32)
    b2 = 0.02 * jax.random.normal(ks[1], (T, A), jnp.float32)
    # GCN weight: kaiming_uniform-style bound; bias zeros
    bound_gcn = (6.0 / D) ** 0.5
    w_gcn = jax.random.uniform(ks[2], (D, G), jnp.float32, -bound_gcn, bound_gcn)
    b_gcn = jnp.zeros((1, G), jnp.float32)
    # Classifier nn.Linear(D+G, C), stored transposed as (G+D, C)
    fan_in = D + G
    bound_cls = (1.0 / fan_in) ** 0.5
    w_cls = jax.random.uniform(ks[3], (G + D, C), jnp.float32, -bound_cls, bound_cls)
    b_cls = jax.random.uniform(ks[4], (1, C), jnp.float32, -bound_cls, bound_cls)
    # Feature-extractor stub params
    emb_table = 0.1 * jax.random.normal(ks[5], (VOCAB, D), jnp.float32)
    w_pooler = 0.1 * jax.random.normal(ks[6], (D, D), jnp.float32)
    return dict(b1=b1, b2=b2, w_gcn=w_gcn, b_gcn=b_gcn, w_cls=w_cls, b_cls=b_cls,
                emb_table=emb_table, w_pooler=w_pooler)


if __name__ == "__main__":
    key = jax.random.PRNGKey(0)
    pkey, ikey, mkey = jax.random.split(key, 3)
    params = init_params(pkey)
    param_slab = pack_param_slab(params)

    # inputs: token ids, attention mask, medical-term mask
    input_ids = jax.random.randint(ikey, (BATCH, TEXT_LEN), 0, VOCAB)
    attention_mask = jnp.ones((BATCH, TEXT_LEN), jnp.int32)
    medical_term_mask = jax.random.bernoulli(mkey, 0.5, (BATCH, TEXT_LEN)).astype(jnp.int32)

    words_feature, sentence_feature = feature_extractor_stub(
        input_ids, attention_mask, params["emb_table"], params["w_pooler"])

    result = total_model_forward(words_feature, medical_term_mask,
                                 sentence_feature, param_slab)
    jax.block_until_ready(result)
    assert result.shape == (BATCH, CLASS_NUM)
    print("KERNEL_OK")
</pallas_src>

<mosaic_0001>
module attributes {stable_mosaic.version = 11 : i64} {
  func.func @total_model_kernel(%arg0: memref<2x8x32xf32, #tpu.memory_space<vmem>>, %arg1: memref<2x8x1xf32, #tpu.memory_space<vmem>>, %arg2: memref<2x32xf32, #tpu.memory_space<vmem>>, %arg3: memref<112x128xf32, #tpu.memory_space<vmem>>, %arg4: memref<2x4xf32, #tpu.memory_space<vmem>>) attributes {dimension_semantics = [], scalar_prefetch = 0 : i64, scratch_operands = 0 : i64, tpu.core_type = #tpu.core_type<tc>} {
    %c0 = arith.constant 0 : index
    %c0_0 = arith.constant 0 : index
    %c0_1 = arith.constant 0 : index
    %0 = vector.load %arg0[%c0, %c0_0, %c0_1] : memref<2x8x32xf32, #tpu.memory_space<vmem>>, vector<2x8x32xf32>
    %c0_2 = arith.constant 0 : index
    %c0_3 = arith.constant 0 : index
    %c0_4 = arith.constant 0 : index
    %1 = vector.load %arg1[%c0_2, %c0_3, %c0_4] : memref<2x8x1xf32, #tpu.memory_space<vmem>>, vector<2x8x1xf32>
    %c0_5 = arith.constant 0 : index
    %c0_6 = arith.constant 0 : index
    %2 = vector.load %arg2[%c0_5, %c0_6] : memref<2x32xf32, #tpu.memory_space<vmem>>, vector<2x32xf32>
    %c0_7 = arith.constant 0 : index
    %c0_8 = arith.constant 0 : index
    %3 = vector.load %arg3[%c0_7, %c0_8] : memref<112x128xf32, #tpu.memory_space<vmem>>, vector<5x8xf32>
    %c8 = arith.constant 8 : index
    %c0_9 = arith.constant 0 : index
    %4 = vector.load %arg3[%c8, %c0_9] : memref<112x128xf32, #tpu.memory_space<vmem>>, vector<8x5xf32>
    %c16 = arith.constant 16 : index
    %c0_10 = arith.constant 0 : index
    %5 = vector.load %arg3[%c16, %c0_10] : memref<112x128xf32, #tpu.memory_space<vmem>>, vector<32x16xf32>
    %c48 = arith.constant 48 : index
    %c0_11 = arith.constant 0 : index
    %6 = vector.load %arg3[%c48, %c0_11] : memref<112x128xf32, #tpu.memory_space<vmem>>, vector<1x16xf32>
    %c56 = arith.constant 56 : index
    %c0_12 = arith.constant 0 : index
    %7 = vector.load %arg3[%c56, %c0_12] : memref<112x128xf32, #tpu.memory_space<vmem>>, vector<16x4xf32>
    %c72 = arith.constant 72 : index
    %c0_13 = arith.constant 0 : index
    %8 = vector.load %arg3[%c72, %c0_13] : memref<112x128xf32, #tpu.memory_space<vmem>>, vector<32x4xf32>
    %c104 = arith.constant 104 : index
    %c0_14 = arith.constant 0 : index
    %9 = vector.load %arg3[%c104, %c0_14] : memref<112x128xf32, #tpu.memory_space<vmem>>, vector<1x4xf32>
    %cst = arith.constant 0.000000e+00 : f32
    %10 = vector.broadcast %cst : f32 to vector<2x8x1xf32>
    %11 = arith.cmpf oeq, %1, %10 : vector<2x8x1xf32>
    %cst_15 = arith.constant 0.000000e+00 : f32
    %12 = vector.shape_cast %11 : vector<2x8x1xi1> to vector<2x8x1xi1>
    %13 = vector.broadcast %12 : vector<2x8x1xi1> to vector<2x8x32xi1>
    %14 = vector.broadcast %cst_15 : f32 to vector<2x8x32xf32>
    %15 = arith.select %13, %14, %0 : vector<2x8x32xi1>, vector<2x8x32xf32>
    %cst_16 = arith.constant dense<0.000000e+00> : vector<2x32xf32>
    %16 = vector.multi_reduction <add>, %15, %cst_16 [1] : vector<2x8x32xf32> to vector<2x32xf32>
    %17 = vector.shape_cast %16 : vector<2x32xf32> to vector<2x1x32xf32>
    %cst_17 = arith.constant 8.000000e+00 : f32
    %18 = vector.broadcast %cst_17 : f32 to vector<2x1x32xf32>
    %19 = arith.divf %17, %18 : vector<2x1x32xf32>
    %20 = vector.broadcast %19 : vector<2x1x32xf32> to vector<2x8x32xf32>
    %21 = arith.mulf %20, %0 : vector<2x8x32xf32>
    %cst_18 = arith.constant dense<0.000000e+00> : vector<2x8xf32>
    %22 = vector.multi_reduction <add>, %21, %cst_18 [2] : vector<2x8x32xf32> to vector<2x8xf32>
    %23 = vector.shape_cast %22 : vector<2x8xf32> to vector<2x1x8xf32>
    %24 = vector.shape_cast %3 : vector<5x8xf32> to vector<1x5x8xf32>
    %25 = vector.broadcast %23 : vector<2x1x8xf32> to vector<2x5x8xf32>
    %26 = vector.broadcast %24 : vector<1x5x8xf32> to vector<2x5x8xf32>
    %27 = arith.addf %25, %26 : vector<2x5x8xf32>
    %cst_19 = arith.constant dense<0xFF800000> : vector<2x5xf32>
    %28 = vector.multi_reduction <maximumf>, %27, %cst_19 [2] : vector<2x5x8xf32> to vector<2x5xf32>
    %29 = vector.shape_cast %28 : vector<2x5xf32> to vector<2x5x1xf32>
    %30 = vector.broadcast %29 : vector<2x5x1xf32> to vector<2x5x8xf32>
    %31 = arith.subf %27, %30 : vector<2x5x8xf32>
    %32 = math.exp %31 : vector<2x5x8xf32>
    %cst_20 = arith.constant dense<0.000000e+00> : vector<2x5xf32>
    %33 = vector.multi_reduction <add>, %32, %cst_20 [2] : vector<2x5x8xf32> to vector<2x5xf32>
    %34 = vector.shape_cast %33 : vector<2x5xf32> to vector<2x5x1xf32>
    %35 = tpu.reciprocal %34 {approx = true} : vector<2x5x1xf32> -> vector<2x5x1xf32>
    %36 = vector.broadcast %35 : vector<2x5x1xf32> to vector<2x5x8xf32>
    %37 = arith.mulf %32, %36 : vector<2x5x8xf32>
    "tpu.trace_start"() <{level = 10 : i32, message = "bat,btd->bad"}> : () -> ()
    %cst_21 = arith.constant dense<0.000000e+00> : vector<2x5x32xf32>
    %38 = tpu.matmul %37, %0, %cst_21 {dimension_numbers = #tpu.dot_dimension_numbers<[2], [1], [1], [2], [0, 0, 0, 1, 1, 2], [0], [0]>} : vector<2x5x8xf32>, vector<2x8x32xf32>, vector<2x5x32xf32> -> vector<2x5x32xf32>
    "tpu.trace_stop"() : () -> ()
    %39 = vector.shape_cast %22 : vector<2x8xf32> to vector<2x8x1xf32>
    %40 = vector.shape_cast %4 : vector<8x5xf32> to vector<1x8x5xf32>
    %41 = vector.broadcast %39 : vector<2x8x1xf32> to vector<2x8x5xf32>
    %42 = vector.broadcast %40 : vector<1x8x5xf32> to vector<2x8x5xf32>
    %43 = arith.addf %41, %42 : vector<2x8x5xf32>
    %cst_22 = arith.constant dense<0xFF800000> : vector<2x8xf32>
    %44 = vector.multi_reduction <maximumf>, %43, %cst_22 [2] : vector<2x8x5xf32> to vector<2x8xf32>
    %45 = vector.shape_cast %44 : vector<2x8xf32> to vector<2x8x1xf32>
    %46 = vector.broadcast %45 : vector<2x8x1xf32> to vector<2x8x5xf32>
    %47 = arith.subf %43, %46 : vector<2x8x5xf32>
    %48 = math.exp %47 : vector<2x8x5xf32>
    %cst_23 = arith.constant dense<0.000000e+00> : vector<2x8xf32>
    %49 = vector.multi_reduction <add>, %48, %cst_23 [2] : vector<2x8x5xf32> to vector<2x8xf32>
    %50 = vector.shape_cast %49 : vector<2x8xf32> to vector<2x8x1xf32>
    %51 = tpu.reciprocal %50 {approx = true} : vector<2x8x1xf32> -> vector<2x8x1xf32>
    %52 = vector.broadcast %51 : vector<2x8x1xf32> to vector<2x8x5xf32>
    %53 = arith.mulf %48, %52 : vector<2x8x5xf32>
    %54 = arith.mulf %0, %0 : vector<2x8x32xf32>
    %cst_24 = arith.constant dense<0.000000e+00> : vector<2x8xf32>
    %55 = vector.multi_reduction <add>, %54, %cst_24 [2] : vector<2x8x32xf32> to vector<2x8xf32>
    %56 = vector.shape_cast %55 : vector<2x8xf32> to vector<2x8x1xf32>
    %cst_25 = arith.constant 1.000000e-16 : f32
    %57 = vector.broadcast %cst_25 : f32 to vector<2x8x1xf32>
    %58 = arith.maximumf %56, %57 : vector<2x8x1xf32>
    %59 = math.rsqrt %58 : vector<2x8x1xf32>
    %60 = vector.broadcast %59 : vector<2x8x1xf32> to vector<2x8x32xf32>
    %61 = arith.mulf %0, %60 : vector<2x8x32xf32>
    %cst_26 = arith.constant dense<0.000000e+00> : vector<2x32xf32>
    %62 = vector.multi_reduction <add>, %61, %cst_26 [1] : vector<2x8x32xf32> to vector<2x32xf32>
    %63 = vector.shape_cast %62 : vector<2x32xf32> to vector<2x1x32xf32>
    %64 = vector.broadcast %63 : vector<2x1x32xf32> to vector<2x8x32xf32>
    %65 = arith.mulf %61, %64 : vector<2x8x32xf32>
    %cst_27 = arith.constant dense<0.000000e+00> : vector<2x8xf32>
    %66 = vector.multi_reduction <add>, %65, %cst_27 [2] : vector<2x8x32xf32> to vector<2x8xf32>
    %cst_28 = arith.constant 1.250000e-01 : f32
    %67 = vector.broadcast %cst_28 : f32 to vector<2x8xf32>
    %68 = arith.mulf %66, %67 : vector<2x8xf32>
    %69 = vector.shape_cast %68 : vector<2x8xf32> to vector<2x8x1xf32>
    %70 = vector.broadcast %69 : vector<2x8x1xf32> to vector<2x8x5xf32>
    %71 = arith.mulf %70, %53 : vector<2x8x5xf32>
    %cst_29 = arith.constant dense<0.000000e+00> : vector<2x5xf32>
    %72 = vector.multi_reduction <add>, %71, %cst_29 [1] : vector<2x8x5xf32> to vector<2x5xf32>
    %73 = vector.shape_cast %72 : vector<2x5xf32> to vector<2x5x1xf32>
    %74 = vector.broadcast %73 : vector<2x5x1xf32> to vector<2x5x32xf32>
    %75 = arith.mulf %74, %38 : vector<2x5x32xf32>
    %cst_30 = arith.constant dense<0.000000e+00> : vector<2x32xf32>
    %76 = vector.multi_reduction <add>, %75, %cst_30 [1] : vector<2x5x32xf32> to vector<2x32xf32>
    %cst_31 = arith.constant dense<0.000000e+00> : vector<2x16xf32>
    %77 = tpu.matmul %76, %5, %cst_31 {dimension_numbers = #tpu.dot_dimension_numbers<[1], [0], [0], [1], [0, 0, 1, 1], [], []>} : vector<2x32xf32>, vector<32x16xf32>, vector<2x16xf32> -> vector<2x16xf32>
    %78 = vector.broadcast %6 : vector<1x16xf32> to vector<2x16xf32>
    %79 = arith.addf %77, %78 : vector<2x16xf32>
    %cst_32 = arith.constant dense<0.000000e+00> : vector<2x4xf32>
    %80 = tpu.matmul %79, %7, %cst_32 {dimension_numbers = #tpu.dot_dimension_numbers<[1], [0], [0], [1], [0, 0, 1, 1], [], []>} : vector<2x16xf32>, vector<16x4xf32>, vector<2x4xf32> -> vector<2x4xf32>
    %cst_33 = arith.constant dense<0.000000e+00> : vector<2x4xf32>
    %81 = tpu.matmul %2, %8, %cst_33 {dimension_numbers = #tpu.dot_dimension_numbers<[1], [0], [0], [1], [0, 0, 1, 1], [], []>} : vector<2x32xf32>, vector<32x4xf32>, vector<2x4xf32> -> vector<2x4xf32>
    %82 = arith.addf %80, %81 : vector<2x4xf32>
    %83 = vector.broadcast %9 : vector<1x4xf32> to vector<2x4xf32>
    %84 = arith.addf %82, %83 : vector<2x4xf32>
    %c0_34 = arith.constant 0 : index
    %c0_35 = arith.constant 0 : index
    %85 = vector.load %arg4[%c0_34, %c0_35] : memref<2x4xf32, #tpu.memory_space<vmem>>, vector<2x4xf32>
    tpu.vector_store %arg4[%c0_34, %c0_35], %84 {strides = array<i32>} : memref<2x4xf32, #tpu.memory_space<vmem>>, vector<2x4xf32>,
    return
  }
}

</mosaic_0001>

<bundles_post_ra>
// kernel: tpu_custom_call.1
= control target key start
LH: loop header
LB: loop body
LE: loop exit
PB: predicated region body
PF: predicated region fallthrough
CT: control target
= control target key end

     0   :  { %9 = vsyncpa [#allocation3], 0  ;;  %s1519_s0 = inlined_call_operand.vmem [shape: f32[2,8,32], index: 0, kind: input, shape index: {}]   ;;  %s1520_s1 = inlined_call_operand.vmem [shape: f32[2,8,1], index: 1, kind: input, shape index: {}]   ;;  %s1521_s2 = inlined_call_operand.vmem [shape: f32[2,32], index: 2, kind: input, shape index: {}]   ;;  %s1522_s3 = inlined_call_operand.hbm [shape: f32[112,128], index: 3, kind: input, shape index: {}]   ;;  %s1523_s4 = inlined_call_operand.hbm [shape: f32[2,4], index: 4, kind: output, shape index: {}]  }
   0x1   :  { %10 = vsyncpa [#allocation4], 0  ;;  %s1222_s15 = smov [#allocation2]  }
   0x2   :  { %s22_s16 = sshll.u32 %s1222_s15, 4  ;;  %s23_s16 = int_to_ptr.vmem [resolvable:$true] %s22_s16 }
   0x3   :  { %s1186_s17 = scalar_lea.vmem %s23_s16, 1792  ;;  %p1191_p1 = scmp.lt.s32.totalorder %s23_s16, %s23_s16 }
   0x4   :  { %p1187_p0 = scmp.ne.s32.totalorder %s23_s16, %s1186_s17  ;;  %p1192_p2 = scmp.lt.s32.totalorder %s1186_s17, %s1186_s17 }
   0x6   :  { %p1193_p3 = por %p1192_p2, %p1191_p1 }
   0x8   :  { %p1194_p4 = pnand %p1193_p3, %p1187_p0 }
   0xa   :  { %1197 = shalt.err (!%p1194_p4)
}
   0xb   :  { %s1223_s18 = smov 128   ;;  %s1224_s19 = smov 8  }
   0xc   :  { %28 = dma.hbm_to_vmem [thread:$0]  %s1522_s3, 1792, %s23_s16, [#allocation3], %s1223_s18, %s1223_s18, %s1224_s19  }
   0xd   :  { %1218 = dma.done.wait [#allocation3], 1792  }
   0xe   :  { %1219 = vsyncadd [#allocation3], 4294965504  ;;  %v1225_v0 = vmov 0   ;;  %v34_v1 = vld [vmem:[%s1520_s1] sm:$0xff]  ;;  %v35_v2 = vld [vmem:[%s1520_s1 + $0x8] sm:$0xff]  ;;  %v92_v5 = vlaneseq  ;;  %vm65_vm2 = vcmask 261120  }
   0xf   :  { %1140 = vset.pattern.permute.xlu0 %v1225_v0  ;;  %1141 = vset.pattern.permute.xlu1 %v1225_v0  ;;  %vm51_vm0 = vcmp.eq.f32.partialorder %v34_v1, 0.0  ;;  %vm52_vm1 = vcmp.eq.f32.partialorder %v35_v2, 0.0  ;;  %v37_v8 = vld [vmem:[#allocation2] sm:$0x1f]  ;;  %v1287_v22 = vld [vmem:[%s1519_s0 + $0x8] sm:$0xff]  ;;  %vm224_vm5 = vcmask 1041409  }
  0x10   :  { %v53_v3 = vsel %vm51_vm0, 1, %v1225_v0  ;;  %v54_v4 = vsel %vm52_vm1, 1, %v1225_v0  ;;  %v93_v6 = vshrl.u32 %v92_v5, 7  ;;  %v183_v7 = vand.u32 127, %v92_v5  ;;  %v1280_v18 = vld [vmem:[%s1519_s0] sm:$0xff]  ;;  %s1228_s29 = smov [#allocation5]  }
  0x11   :  { %56 = vperm.xlu0 %1140, %v53_v3   ;;  %vm226_vm6 = vcmask 1042434   ;;  %vm228_vm7 = vcmask 1043459   ;;  %vm230_vm8 = vcmask 1044484   ;;  %vm238_vm9 = vcmask 61440   ;;  %s1061_s30 = sshll.u32 %s1228_s29, 4  ;;  %s1062_s30 = int_to_ptr.vmem [resolvable:$true] %s1061_s30 }
  0x12   :  { %v1263_v9 = vsub.s32 0, %v93_v6  ;;  %v1265_v10 = vsub.s32 %v183_v7, %v93_v6  ;;  %v1267_v11 = vsub.s32 2, %v93_v6  ;;  %v1271_v14 = vsub.s32 3, %v93_v6  ;;  %p1203_p6 = scmp.lt.s32.totalorder %s1062_s30, %s1062_s30 }
  0x13   :  { %v1274_v16 = vsub.s32 4, %v93_v6  ;;  %v1295_v44 = vsub.s32 1, %v93_v6  ;;  %vm1227_vm10 = vmmov 0   ;;  %vm722_vm11 = vcmask 39936  }
  0x14   :  { %v95_v12 = vrot.slane %v37_v8, %v1263_v9  ;;  %v109_v13 = vrot.slane %v37_v8, %v1267_v11  ;;  %v116_v15 = vrot.slane %v37_v8, %v1271_v14  ;;  %vm531_vm12 = vcmask 64512  }
  0x15   :  { %59 = vperm.xlu0 %1140, %v54_v4   ;;  %v123_v17 = vrot.slane %v37_v8, %v1274_v16  ;;  %v102_v45 = vrot.slane %v37_v8, %v1295_v44  ;;  %vm807_vm13 = vcmask 258048   ;;  %vm974_vm14 = vcmask 130048  }
  0x16   :  { %vm1053_vm15 = vcmask 25600  }
  0x19   :  { %97 = vbcast.lane.b32.xlu0 %v95_v12, 256 }
  0x1d   :  { %111 = vbcast.lane.b32.xlu0 %v109_v13, 256 }
  0x21   :  { %118 = vbcast.lane.b32.xlu0 %v116_v15, 256 }
  0x25   :  { %125 = vbcast.lane.b32.xlu0 %v123_v17, 256 }
  0x8c   :  { %v57_v19 = vpop.permute.xlu0 %56 }
  0x8d   :  { %vm61_vm3 = vcmp.eq.s32.totalorder %v57_v19, 1 }
  0x8e   :  { %v63_v20 = vsel %vm61_vm3, 0.0, %v1280_v18 }
  0x8f   :  { %v66_v21 = vsel %vm65_vm2, %v63_v20, 0.0 }
  0x90   :  { %v67_v23 = vrot.slane %v66_v21, 4  ;;  %v60_v24 = vpop.permute.xlu0 %59 }
  0x91   :  { %vm62_vm4 = vcmp.eq.s32.totalorder %v60_v24, 1 }
  0x92   :  { %v68_v25 = vadd.f32 %v67_v23, %v66_v21  ;;  %v64_v26 = vsel %vm62_vm4, 0.0, %v1287_v22 }
  0x93   :  { %v73_v27 = vsel %vm65_vm2, %v64_v26, 0.0 }
  0x94   :  { %v69_v28 = vrot.slane %v68_v25, 2  ;;  %v74_v29 = vrot.slane %v73_v27, 4  ;;  %v98_v46 = vpop.permute.xlu0 %97 }
  0x96   :  { %v70_v30 = vadd.f32 %v69_v28, %v68_v25  ;;  %v75_v31 = vadd.f32 %v74_v29, %v73_v27 }
  0x98   :  { %v76_v32 = vrot.slane %v75_v31, 2  ;;  %v71_v33 = vrot.slane %v70_v30, 1  ;;  %v112_v49 = vpop.permute.xlu0 %111 }
  0x9a   :  { %v77_v34 = vadd.f32 %v76_v32, %v75_v31  ;;  %v72_v35 = vadd.f32 %v71_v33, %v70_v30 }
  0x9c   :  { %v81_v36 = vmul.f32 0.125, %v72_v35  ;;  %v78_v37 = vrot.slane %v77_v34, 1  ;;  %v119_v52 = vpop.permute.xlu0 %118 }
  0x9e   :  { %v83_v38 = vmul.f32 %v81_v36, %v1280_v18  ;;  %v79_v39 = vadd.f32 %v78_v37, %v77_v34 }
  0xa0   :  { %v85_v40 = vsel %vm65_vm2, %v83_v38, 0.0  ;;  %v82_v41 = vmul.f32 0.125, %v79_v39  ;;  %v126_v58 = vpop.permute.xlu0 %125 }
  0xa1   :  { %86 = vadd.xlane.f32.xlu1 %v85_v40 }
  0xa2   :  { %v84_v42 = vmul.f32 %v82_v41, %v1287_v22 }
  0xa4   :  { %v88_v43 = vsel %vm65_vm2, %v84_v42, 0.0 }
  0xa5   :  { %89 = vadd.xlane.f32.xlu1 %v88_v43 }
  0xb6   :  { %104 = vbcast.lane.b32.xlu1 %v102_v45, 256 }
 0x12a   :  { %v1298_v47 = vpop.xlane.xlu1 %86 }
 0x12b   :  { %v1301_v48 = vadd.f32 %v98_v46, %v1298_v47  ;;  %v1312_v55 = vadd.f32 %v112_v49, %v1298_v47  ;;  %v1319_v57 = vadd.f32 %v119_v52, %v1298_v47  ;;  %v1324_v59 = vadd.f32 %v126_v58, %v1298_v47 }
 0x12d   :  { %153 = vperm.xlu0 %1140, %v1301_v48  }
 0x12e   :  { %v1304_v50 = vpop.xlane.xlu1 %89 }
 0x12f   :  { %v1307_v51 = vadd.f32 %v98_v46, %v1304_v50  ;;  %v1327_v60 = vadd.f32 %v112_v49, %v1304_v50  ;;  %v1332_v61 = vadd.f32 %v119_v52, %v1304_v50  ;;  %v1336_v62 = vadd.f32 %v126_v58, %v1304_v50 }
 0x131   :  { %168 = vperm.xlu0 %1140, %v1307_v51  }
 0x132   :  { %v105_v53 = vpop.permute.xlu1 %104 }
 0x133   :  { %v133_v54 = vadd.f32 %v105_v53, %v1298_v47  ;;  %v1316_v56 = vadd.f32 %v105_v53, %v1304_v50 }
 0x135   :  { %159 = vperm.xlu0 %1140, %v1312_v55   ;;  %156 = vperm.xlu1 %1141, %v133_v54  }
 0x139   :  { %162 = vperm.xlu0 %1140, %v1319_v57   ;;  %171 = vperm.xlu1 %1141, %v1316_v56  }
 0x13d   :  { %165 = vperm.xlu0 %1140, %v1324_v59   ;;  %174 = vperm.xlu1 %1141, %v1327_v60  }
 0x141   :  { %177 = vperm.xlu1 %1141, %v1332_v61  }
 0x145   :  { %180 = vperm.xlu1 %1141, %v1336_v62  }
 0x1a8   :  { %v154_v63 = vpop.permute.xlu0 %153 }
 0x1a9   :  { %v187_v4 = vrot.slane %v154_v63, %v1265_v10 }
 0x1ac   :  { %v169_v0 = vpop.permute.xlu0 %168 }
 0x1ad   :  { %v207_v27 = vrot.slane %v169_v0, %v1265_v10 }
 0x1b0   :  { %v160_v1 = vpop.permute.xlu0 %159  ;;  %v157_v2 = vpop.permute.xlu1 %156 }
 0x1b1   :  { %v191_v3 = vrot.slane %v157_v2, %v1265_v10  ;;  %v195_v7 = vrot.slane %v160_v1, %v1265_v10 }
 0x1b3   :  { %v225_v8 = vsel %vm224_vm5, %v191_v3, %v187_v4 }
 0x1b4   :  { %v163_v5 = vpop.permute.xlu0 %162  ;;  %v172_v6 = vpop.permute.xlu1 %171  ;;  %v227_v19 = vsel %vm226_vm6, %v195_v7, %v225_v8 }
 0x1b5   :  { %v199_v12 = vrot.slane %v163_v5, %v1265_v10  ;;  %v211_v23 = vrot.slane %v172_v6, %v1265_v10 }
 0x1b7   :  { %v229_v20 = vsel %vm228_vm7, %v199_v12, %v227_v19  ;;  %v232_v29 = vsel %vm224_vm5, %v211_v23, %v207_v27 }
 0x1b8   :  { %v166_v13 = vpop.permute.xlu0 %165  ;;  %v175_v15 = vpop.permute.xlu1 %174 }
 0x1b9   :  { %v203_v17 = vrot.slane %v166_v13, %v1265_v10  ;;  %v215_v26 = vrot.slane %v175_v15, %v1265_v10 }
 0x1bb   :  { %v231_v21 = vsel %vm230_vm8, %v203_v17, %v229_v20  ;;  %v233_v31 = vsel %vm226_vm6, %v215_v26, %v232_v29 }
 0x1bc   :  { %v178_v24 = vpop.permute.xlu1 %177  ;;  %v239_v25 = vsel %vm238_vm9, %v231_v21, -inf }
 0x1bd   :  { %240 = vmax.xlane.f32.xlu0 %v239_v25  ;;  %v219_v28 = vrot.slane %v178_v24, %v1265_v10 }
 0x1bf   :  { %v234_v33 = vsel %vm228_vm7, %v219_v28, %v233_v31 }
 0x1c0   :  { %v181_v30 = vpop.permute.xlu1 %180 }
 0x1c1   :  { %v223_v32 = vrot.slane %v181_v30, %v1265_v10 }
 0x1c3   :  { %v235_v34 = vsel %vm230_vm8, %v223_v32, %v234_v33 }
 0x1c4   :  { %v242_v35 = vsel %vm238_vm9, %v235_v34, -inf }
 0x1c5   :  { %243 = vmax.xlane.f32.xlu1 %v242_v35 }
 0x246   :  { %v241_v36 = vpop.xlane.xlu0 %240 }
 0x247   :  { %v250_v37 = vrot.slane %v241_v36, %v1263_v9  ;;  %v254_v38 = vrot.slane %v241_v36, %v1295_v44  ;;  %v258_v43 = vrot.slane %v241_v36, %v1267_v11  ;;  %v262_v53 = vrot.slane %v241_v36, %v1271_v14 }
 0x248   :  { %v266_v3 = vrot.slane %v241_v36, %v1274_v16 }
 0x249   :  { %v297_v39 = vsub.f32 %v1301_v48, %v250_v37  ;;  %v298_v40 = vsub.f32 %v133_v54, %v254_v38  ;;  %v299_v58 = vsub.f32 %v1312_v55, %v258_v43  ;;  %v300_v4 = vsub.f32 %v1319_v57, %v262_v53 }
 0x24b   :  { %v307_v41 = vmul.f32 1.442695, %v297_v39  ;;  %v309_v42 = vmul.f32 1.442695, %v298_v40  ;;  %v311_v5 = vmul.f32 1.442695, %v299_v58  ;;  %v745_v58 = vmul.f32 %v1280_v18, %v1280_v18 }
 0x24c   :  { %v313_v7 = vmul.f32 1.442695, %v300_v4 }
 0x24d   :  { %1142 = vpow2.f32 %v307_v41 }
 0x24e   :  { %1144 = vpow2.f32 %v309_v42  ;;  %v244_v45 = vpop.xlane.xlu1 %243 }
 0x24f   :  { %v270_v46 = vrot.slane %v244_v45, %v1263_v9  ;;  %v274_v49 = vrot.slane %v244_v45, %v1295_v44  ;;  %v278_v52 = vrot.slane %v244_v45, %v1267_v11  ;;  %v282_v63 = vrot.slane %v244_v45, %v1271_v14 }
 0x250   :  { %v286_v6 = vrot.slane %v244_v45, %v1274_v16 }
 0x251   :  { %v302_v48 = vsub.f32 %v1307_v51, %v270_v46  ;;  %v303_v54 = vsub.f32 %v1316_v56, %v274_v49  ;;  %v304_v0 = vsub.f32 %v1327_v60, %v278_v52  ;;  %v305_v55 = vsub.f32 %v1332_v61, %v282_v63 }
 0x252   :  { %v301_v56 = vsub.f32 %v1324_v59, %v266_v3  ;;  %v306_v60 = vsub.f32 %v1336_v62, %v286_v6 }
 0x253   :  { %v317_v1 = vmul.f32 1.442695, %v302_v48  ;;  %v319_v2 = vmul.f32 1.442695, %v303_v54  ;;  %v321_v51 = vmul.f32 1.442695, %v304_v0 }
 0x254   :  { %v323_v12 = vmul.f32 1.442695, %v305_v55  ;;  %v315_v57 = vmul.f32 1.442695, %v301_v56  ;;  %v325_v61 = vmul.f32 1.442695, %v306_v60 }
 0x255   :  { %1146 = vpow2.f32 %v317_v1 }
 0x256   :  { %1148 = vpow2.f32 %v319_v2  ;;  %v747_v2 = vsel %vm65_vm2, %v745_v58, 0.0 }
 0x257   :  { %1150 = vpow2.f32 %v311_v5 }
 0x258   :  { %1152 = vpow2.f32 %v321_v51 }
 0x259   :  { %1154 = vpow2.f32 %v313_v7 }
 0x25a   :  { %v1377_v8 = vpop.eup %1142  ;;  %1156 = vpow2.f32 %v323_v12 }
 0x25b   :  { %v1380_v13 = vpop.eup %1144  ;;  %338 = vperm.xlu0 %1140, %v1377_v8   ;;  %1158 = vpow2.f32 %v315_v57 }
 0x25c   :  { %341 = vperm.xlu1 %1141, %v1380_v13   ;;  %1160 = vpow2.f32 %v325_v61 }
 0x262   :  { %v1384_v59 = vpop.eup %1146 }
 0x263   :  { %v1386_v15 = vpop.eup %1148  ;;  %353 = vperm.xlu0 %1140, %v1384_v59  }
 0x264   :  { %356 = vperm.xlu1 %1141, %v1386_v15   ;;  %v1390_v62 = vpop.eup %1150 }
 0x265   :  { %v1392_v17 = vpop.eup %1152 }
 0x266   :  { %v1396_v19 = vpop.eup %1154 }
 0x267   :  { %344 = vperm.xlu0 %1140, %v1390_v62   ;;  %v1398_v20 = vpop.eup %1156 }
 0x268   :  { %359 = vperm.xlu1 %1141, %v1392_v17   ;;  %v1402_v21 = vpop.eup %1158 }
 0x269   :  { %v1404_v23 = vpop.eup %1160 }
 0x26b   :  { %347 = vperm.xlu0 %1140, %v1396_v19  }
 0x26c   :  { %362 = vperm.xlu1 %1141, %v1398_v20  }
 0x26f   :  { %350 = vperm.xlu0 %1140, %v1402_v21  }
 0x270   :  { %365 = vperm.xlu1 %1141, %v1404_v23  }
 0x2d6   :  { %v339_v24 = vpop.permute.xlu0 %338 }
 0x2d7   :  { %v342_v25 = vpop.permute.xlu1 %341  ;;  %v370_v30 = vrot.slane %v339_v24, %v1265_v10 }
 0x2d8   :  { %v374_v31 = vrot.slane %v342_v25, %v1265_v10 }
 0x2da   :  { %v407_v40 = vsel %vm224_vm5, %v374_v31, %v370_v30 }
 0x2de   :  { %v354_v26 = vpop.permute.xlu0 %353 }
 0x2df   :  { %v357_v27 = vpop.permute.xlu1 %356  ;;  %v390_v33 = vrot.slane %v354_v26, %v1265_v10 }
 0x2e0   :  { %v394_v34 = vrot.slane %v357_v27, %v1265_v10  ;;  %v1226_v27 = vmov 0.0  }
 0x2e1   :  { %1094 = vmatprep.subr.mxu0 %v1226_v27  ;;  %1099 = vmatprep.subr.mxu1 %v1226_v27 }
 0x2e2   :  { %v345_v28 = vpop.permute.xlu0 %344  ;;  %v411_v42 = vsel %vm224_vm5, %v394_v34, %v390_v33  ;;  %1095 = vmatpush3.msra.mxu0 %v1280_v18  ;;  %1096 = vmatprep.mubr.msk.f32.mxu0 %vm1227_vm10, %v1226_v27 }
 0x2e3   :  { %v360_v29 = vpop.permute.xlu1 %359  ;;  %v378_v35 = vrot.slane %v345_v28, %v1265_v10  ;;  %1100 = vmatpush3.msra.mxu1 %v1287_v22  ;;  %1101 = vmatprep.mubr.msk.f32.mxu1 %vm1227_vm10, %v1226_v27 }
 0x2e4   :  { %v398_v37 = vrot.slane %v360_v29, %v1265_v10  ;;  %1104 = vmatprep.subr.mxu0 %v1226_v27  ;;  %1115 = vmatprep.subr.mxu1 %v1226_v27 }
 0x2e5   :  { %v408_v43 = vsel %vm226_vm6, %v378_v35, %v407_v40 }
 0x2e6   :  { %v348_v32 = vpop.permute.xlu0 %347  ;;  %v412_v49 = vsel %vm226_vm6, %v398_v37, %v411_v42 }
 0x2e7   :  { %v363_v36 = vpop.permute.xlu1 %362  ;;  %v382_v38 = vrot.slane %v348_v32, %v1265_v10 }
 0x2e8   :  { %v402_v39 = vrot.slane %v363_v36, %v1265_v10 }
 0x2e9   :  { %v409_v53 = vsel %vm228_vm7, %v382_v38, %v408_v43 }
 0x2ea   :  { %v351_v41 = vpop.permute.xlu0 %350  ;;  %v413_v54 = vsel %vm228_vm7, %v402_v39, %v412_v49 }
 0x2eb   :  { %v386_v45 = vrot.slane %v351_v41, %v1265_v10  ;;  %v366_v46 = vpop.permute.xlu1 %365 }
 0x2ec   :  { %v406_v52 = vrot.slane %v366_v46, %v1265_v10 }
 0x2ed   :  { %v410_v48 = vsel %vm230_vm8, %v386_v45, %v409_v53 }
 0x2ee   :  { %v417_v63 = vsel %vm238_vm9, %v410_v48, 0.0  ;;  %v414_v0 = vsel %vm230_vm8, %v406_v52, %v413_v54 }
 0x2ef   :  { %418 = vadd.xlane.f32.xlu0 %v417_v63  ;;  %v420_v1 = vsel %vm238_vm9, %v414_v0, 0.0 }
 0x2f0   :  { %421 = vadd.xlane.f32.xlu1 %v420_v1 }
 0x2f3   :  { %748 = vadd.xlane.f32.xlu0 %v747_v2 }
 0x378   :  { %v419_v3 = vpop.xlane.xlu0 %418 }
 0x379   :  { %1162 = vrcp.f32 %v419_v3  ;;  %v422_v4 = vpop.xlane.xlu1 %421 }
 0x37a   :  { %1164 = vrcp.f32 %v422_v4 }
 0x37c   :  { %v749_v29 = vpop.xlane.xlu0 %748 }
 0x37d   :  { %v753_v3 = vmax.f32 %v749_v29, 1e-16 }
 0x37f   :  { %1166 = vrsqrt.f32 %v753_v3 }
 0x386   :  { %v1163_v5 = vpop.eup %1162 }
 0x387   :  { %v1165_v6 = vpop.eup %1164  ;;  %v430_v55 = vrot.slane %v1163_v5, %v1263_v9  ;;  %v434_v51 = vrot.slane %v1163_v5, %v1295_v44  ;;  %v438_v25 = vrot.slane %v1163_v5, %v1267_v11 }
 0x388   :  { %v454_v60 = vrot.slane %v1165_v6, %v1295_v44  ;;  %v450_v12 = vrot.slane %v1165_v6, %v1263_v9  ;;  %v458_v24 = vrot.slane %v1165_v6, %v1267_v11  ;;  %v462_v44 = vrot.slane %v1165_v6, %v1271_v14 }
 0x389   :  { %v477_v56 = vmul.f32 %v1377_v8, %v430_v55  ;;  %v478_v7 = vmul.f32 %v1380_v13, %v434_v51  ;;  %v479_v13 = vmul.f32 %v1390_v62, %v438_v25  ;;  %v442_v9 = vrot.slane %v1163_v5, %v1271_v14 }
 0x38a   :  { %v483_v57 = vmul.f32 %v1386_v15, %v454_v60  ;;  %v482_v61 = vmul.f32 %v1384_v59, %v450_v12  ;;  %v484_v8 = vmul.f32 %v1392_v17, %v458_v24  ;;  %v485_v15 = vmul.f32 %v1398_v20, %v462_v44 }
 0x38b   :  { %493 = vperm.xlu0 %1140, %v477_v56   ;;  %496 = vperm.xlu1 %1141, %v478_v7   ;;  %v480_v59 = vmul.f32 %v1396_v19, %v442_v9  ;;  %v466_v26 = vrot.slane %v1165_v6, %v1274_v16  ;;  %v446_v11 = vrot.slane %v1163_v5, %v1274_v16  ;;  %v38_v16 = vld [vmem:[#allocation2 + $0x8] sm:$0xff] }
 0x38c   :  { %v720_v17 = vadd.f32 %v1298_v47, %v38_v16  ;;  %v746_v19 = vmul.f32 %v1287_v22, %v1287_v22  ;;  %v1167_v4 = vpop.eup %1166 }
 0x38d   :  { %v486_v62 = vmul.f32 %v1404_v23, %v466_v26  ;;  %v481_v14 = vmul.f32 %v1402_v21, %v446_v11  ;;  %v721_v21 = vadd.f32 %v1304_v50, %v38_v16 }
 0x38e   :  { %v723_v20 = vsel %vm722_vm11, %v720_v17, -inf  ;;  %v750_v23 = vsel %vm65_vm2, %v746_v19, 0.0 }
 0x38f   :  { %613 = vperm.xlu1 %1141, %v483_v57   ;;  %610 = vperm.xlu0 %1140, %v482_v61   ;;  %v726_v28 = vsel %vm722_vm11, %v721_v21, -inf }
 0x393   :  { %616 = vperm.xlu1 %1141, %v484_v8   ;;  %499 = vperm.xlu0 %1140, %v479_v13  }
 0x397   :  { %619 = vperm.xlu1 %1141, %v485_v15   ;;  %502 = vperm.xlu0 %1140, %v480_v59  }
 0x39b   :  { %622 = vperm.xlu1 %1141, %v486_v62   ;;  %505 = vperm.xlu0 %1140, %v481_v14  }
 0x3ba   :  { %724 = vmax.xlane.f32.xlu0 %v723_v20 }
 0x3be   :  { %727 = vmax.xlane.f32.xlu0 %v726_v28 }
 0x3bf   :  { %751 = vadd.xlane.f32.xlu1 %v750_v23 }
 0x406   :  { %v494_v30 = vpop.permute.xlu0 %493  ;;  %v497_v31 = vpop.permute.xlu1 %496 }
 0x407   :  { %v510_v35 = vrot.slane %v494_v30, %v1265_v10  ;;  %v514_v36 = vrot.slane %v497_v31, %v1265_v10 }
 0x409   :  { %v527_v45 = vsel %vm224_vm5, %v514_v36, %v510_v35 }
 0x40a   :  { %v611_v32 = vpop.permute.xlu0 %610  ;;  %v614_v47 = vpop.permute.xlu1 %613 }
 0x40b   :  { %v627_v50 = vrot.slane %v611_v32, %v1265_v10  ;;  %v631_v37 = vrot.slane %v614_v47, %v1265_v10 }
 0x40d   :  { %v644_v46 = vsel %vm224_vm5, %v631_v37, %v627_v50 }
 0x40e   :  { %v500_v33 = vpop.permute.xlu0 %499  ;;  %v617_v34 = vpop.permute.xlu1 %616 }
 0x40f   :  { %v518_v40 = vrot.slane %v500_v33, %v1265_v10  ;;  %v635_v41 = vrot.slane %v617_v34, %v1265_v10 }
 0x411   :  { %v528_v53 = vsel %vm226_vm6, %v518_v40, %v527_v45  ;;  %v645_v58 = vsel %vm226_vm6, %v635_v41, %v644_v46 }
 0x412   :  { %v503_v38 = vpop.permute.xlu0 %502  ;;  %v620_v39 = vpop.permute.xlu1 %619 }
 0x413   :  { %v522_v42 = vrot.slane %v503_v38, %v1265_v10  ;;  %v639_v43 = vrot.slane %v620_v39, %v1265_v10 }
 0x415   :  { %v529_v63 = vsel %vm228_vm7, %v522_v42, %v528_v53  ;;  %v646_v0 = vsel %vm228_vm7, %v639_v43, %v645_v58 }
 0x416   :  { %v506_v49 = vpop.permute.xlu0 %505  ;;  %v623_v52 = vpop.permute.xlu1 %622 }
 0x417   :  { %v526_v48 = vrot.slane %v506_v49, %v1265_v10  ;;  %v643_v54 = vrot.slane %v623_v52, %v1265_v10  ;;  %v757_v10 = vmul.f32 %v1167_v4, %v1280_v18 }
 0x419   :  { %v530_v1 = vsel %vm230_vm8, %v526_v48, %v529_v63  ;;  %v647_v2 = vsel %vm230_vm8, %v643_v54, %v646_v0  ;;  %v759_v5 = vsel %vm65_vm2, %v757_v10, 0.0 }
 0x41a   :  { %1097 = vmatmul.mubr.msk.f32.vlgmr.msra.gmra.mxu0 %vm531_vm12, %v530_v1  ;;  %1102 = vmatmul.mubr.msk.f32.vlgmr.msra.gmra.mxu1 %vm531_vm12, %v647_v2  ;;  %v760_v6 = vrot.slane %v759_v5, 4 }
 0x41b   :  { %1112 = vmatprep.mubr.msk.f32.mxu0 %vm1227_vm10, %v1226_v27  ;;  %1123 = vmatprep.mubr.msk.f32.mxu1 %vm1227_vm10, %v1226_v27 }
 0x41c   :  { %v761_v55 = vadd.f32 %v760_v6, %v759_v5  ;;  %v41_v5 = vld [vmem:[#allocation2 + $0x20] sm:$0xff]  ;;  %v40_v6 = vld [vmem:[#allocation2 + $0x18] sm:$0xff] }
 0x41e   :  { %v762_v60 = vrot.slane %v761_v55, 2 }
 0x420   :  { %v763_v8 = vadd.f32 %v762_v60, %v761_v55  ;;  %v39_v55 = vld [vmem:[#allocation2 + $0x10] sm:$0xff] }
 0x422   :  { %v764_v13 = vrot.slane %v763_v8, 1 }
 0x424   :  { %v765_v44 = vadd.f32 %v764_v13, %v763_v8 }
 0x426   :  { %v773_v15 = vmul.f32 %v765_v44, %v757_v10  ;;  %v42_v10 = vld [vmem:[#allocation2 + $0x28] sm:$0xff] }
 0x427   :  { %1105 = vmatpush3.msra.mxu0 %v42_v10 }
 0x428   :  { %v775_v62 = vsel %vm65_vm2, %v773_v15, 0.0  ;;  %1106 = vmatprep.subr.mxu0 %v1226_v27 }
 0x429   :  { %1107 = vmatpush3.msra.mxu0 %v41_v5 }
 0x42a   :  { %1108 = vmatprep.subr.mxu0 %v1226_v27 }
 0x42b   :  { %1109 = vmatpush3.msra.mxu0 %v40_v6 }
 0x42c   :  { %1110 = vmatprep.subr.mxu0 %v1226_v27 }
 0x42d   :  { %1111 = vmatpush3.msra.mxu0 %v39_v55 }
 0x42e   :  { %1126 = vmatprep.subr.mxu0 %v1226_v27 }
 0x443   :  { %v725_v51 = vpop.xlane.xlu0 %724 }
 0x444   :  { %v729_v56 = vsub.f32 %v720_v17, %v725_v51  ;;  %v49_v51 = vld [vmem:[#allocation2 + $0x60] sm:$0xff] }
 0x445   :  { %1116 = vmatpush3.msra.mxu1 %v49_v51 }
 0x446   :  { %v731_v7 = vmul.f32 1.442695, %v729_v56  ;;  %v48_v56 = vld [vmem:[#allocation2 + $0x58] sm:$0xff]  ;;  %1117 = vmatprep.subr.mxu1 %v1226_v27 }
 0x447   :  { %v728_v12 = vpop.xlane.xlu0 %727  ;;  %1118 = vmatpush3.msra.mxu1 %v48_v56 }
 0x448   :  { %1168 = vpow2.f32 %v731_v7  ;;  %v730_v57 = vsub.f32 %v721_v21, %v728_v12  ;;  %v752_v61 = vpop.xlane.xlu1 %751  ;;  %v47_v7 = vld [vmem:[#allocation2 + $0x50] sm:$0xff]  ;;  %1119 = vmatprep.subr.mxu1 %v1226_v27 }
 0x449   :  { %v754_v24 = vmax.f32 %v752_v61, 1e-16  ;;  %1120 = vmatpush3.msra.mxu1 %v47_v7 }
 0x44a   :  { %v733_v25 = vmul.f32 1.442695, %v730_v57  ;;  %1121 = vmatprep.subr.mxu1 %v1226_v27 }
 0x44b   :  { %1170 = vrsqrt.f32 %v754_v24 }
 0x44c   :  { %1172 = vpow2.f32 %v733_v25 }
 0x455   :  { %v1169_v18 = vpop.eup %1168 }
 0x456   :  { %v735_v9 = vsel %vm722_vm11, %v1169_v18, 0.0 }
 0x457   :  { %736 = vadd.xlane.f32.xlu1 %v735_v9 }
 0x458   :  { %v1171_v59 = vpop.eup %1170 }
 0x459   :  { %v1173_v26 = vpop.eup %1172  ;;  %v758_v11 = vmul.f32 %v1171_v59, %v1287_v22 }
 0x45a   :  { %v738_v14 = vsel %vm722_vm11, %v1173_v26, 0.0 }
 0x45b   :  { %776 = vadd.xlane.f32.xlu1 %v775_v62  ;;  %739 = vadd.xlane.f32.xlu0 %v738_v14  ;;  %v766_v16 = vsel %vm65_vm2, %v758_v11, 0.0 }
 0x45c   :  { %v767_v17 = vrot.slane %v766_v16, 4 }
 0x45e   :  { %v768_v19 = vadd.f32 %v767_v17, %v766_v16  ;;  %v45_v17 = vld [vmem:[#allocation2 + $0x40] sm:$0xff] }
 0x460   :  { %v769_v20 = vrot.slane %v768_v19, 2 }
 0x462   :  { %v770_v21 = vadd.f32 %v769_v20, %v768_v19  ;;  %v46_v20 = vld [vmem:[#allocation2 + $0x48] sm:$0xff] }
 0x463   :  { %1122 = vmatpush3.msra.mxu1 %v46_v20 }
 0x464   :  { %v771_v23 = vrot.slane %v770_v21, 1 }
 0x466   :  { %v772_v28 = vadd.f32 %v771_v23, %v770_v21  ;;  %v36_v21 = vld [vmem:[%s1521_s2] sm:$0x3]  ;;  %v44_v23 = vld [vmem:[#allocation2 + $0x38] sm:$0xff]  ;;  %s1198_s2 = scalar_lea.vmem %s1062_s30, 32 }
 0x467   :  { %1124 = vmatmul.mubr.msk.f32.vlgmr.msra.gmra.mxu1 %vm65_vm2, %v36_v21  ;;  %p1199_p5 = scmp.ne.s32.totalorder %s1062_s30, %s1198_s2  ;;  %p1204_p7 = scmp.lt.s32.totalorder %s1198_s2, %s1198_s2 }
 0x468   :  { %v774_v29 = vmul.f32 %v772_v28, %v758_v11  ;;  %v1072_v28 = vld [vmem:[#allocation2 + $0x30] ss:$0 sm:$0xff] }
 0x469   :  { %p1205_p8 = por %p1204_p7, %p1203_p6 }
 0x46a   :  { %v778_v30 = vsel %vm65_vm2, %v774_v29, 0.0 }
 0x46b   :  { %779 = vadd.xlane.f32.xlu0 %v778_v30  ;;  %p1206_p9 = pnand %p1205_p8, %p1199_p5 }
 0x4da   :  { %v600_v31 = vpop.f32.mrf.mxu0  ;;  %v716_v22 = vpop.f32.mrf.mxu1 }
 0x4dc   :  { %v1098_v32 = vpop.f32.mrf.mxu0  ;;  %v1103_v47 = vpop.f32.mrf.mxu1 }
 0x4dd   :  { %v1076_v47 = vld [vmem:[#allocation2 + $0x68] ss:$0 sm:$0xff] }
 0x4e0   :  { %v737_v33 = vpop.xlane.xlu1 %736 }
 0x4e1   :  { %1174 = vrcp.f32 %v737_v33 }
 0x4e4   :  { %v740_v34 = vpop.xlane.xlu0 %739  ;;  %v777_v35 = vpop.xlane.xlu1 %776 }
 0x4e5   :  { %1176 = vrcp.f32 %v740_v34  ;;  %v781_v37 = vmul.f32 0.125, %v777_v35 }
 0x4ee   :  { %v1175_v36 = vpop.eup %1174 }
 0x4ef   :  { %v743_v50 = vmul.f32 %v1175_v36, %v1169_v18 }
 0x4f1   :  { %v783_v38 = vmul.f32 %v781_v37, %v743_v50 }
 0x4f2   :  { %v1177_v39 = vpop.eup %1176 }
 0x4f3   :  { %v785_v40 = vsel %vm722_vm11, %v783_v38, 0.0  ;;  %v744_v43 = vmul.f32 %v1177_v39, %v1173_v26 }
 0x4f4   :  { %v786_v41 = vrot.slane %v785_v40, 4  ;;  %v780_v42 = vpop.xlane.xlu0 %779 }
 0x4f5   :  { %v782_v45 = vmul.f32 0.125, %v780_v42 }
 0x4f6   :  { %v787_v46 = vadd.f32 %v786_v41, %v785_v40 }
 0x4f7   :  { %v784_v49 = vmul.f32 %v782_v45, %v744_v43 }
 0x4f8   :  { %v788_v52 = vrot.slane %v787_v46, 2 }
 0x4f9   :  { %v792_v53 = vsel %vm722_vm11, %v784_v49, 0.0 }
 0x4fa   :  { %v793_v58 = vrot.slane %v792_v53, 4  ;;  %v789_v48 = vadd.f32 %v788_v52, %v787_v46 }
 0x4fc   :  { %v790_v54 = vrot.slane %v789_v48, 1  ;;  %v794_v63 = vadd.f32 %v793_v58, %v792_v53 }
 0x4fe   :  { %v791_v0 = vadd.f32 %v790_v54, %v789_v48  ;;  %v795_v1 = vrot.slane %v794_v63, 2 }
 0x500   :  { %800 = vbcast.lane.b32.xlu1 %v791_v0, 256  ;;  %v796_v2 = vadd.f32 %v795_v1, %v794_v63 }
 0x502   :  { %v797_v3 = vrot.slane %v796_v2, 1 }
 0x504   :  { %v798_v4 = vadd.f32 %v797_v3, %v796_v2 }
 0x506   :  { %803 = vbcast.lane.b32.xlu0 %v798_v4, 256 }
 0x572   :  { %v801_v60 = vpop.permute.xlu1 %800 }
 0x573   :  { %v805_v12 = vmul.f32 %v801_v60, %v600_v31 }
 0x575   :  { %v808_v57 = vsel %vm807_vm13, %v805_v12, 0.0 }
 0x576   :  { %v809_v61 = vrot.slane %v808_v57, 4 }
 0x578   :  { %v810_v24 = vadd.f32 %v809_v61, %v808_v57  ;;  %v804_v25 = vpop.permute.xlu0 %803 }
 0x579   :  { %v806_v8 = vmul.f32 %v804_v25, %v716_v22  ;;  %v970_v22 = vpop.f32.mrf.mxu1 }
 0x57a   :  { %v811_v13 = vrot.slane %v810_v24, 2 }
 0x57b   :  { %v815_v44 = vsel %vm807_vm13, %v806_v8, 0.0  ;;  %v1125_v32 = vpop.f32.mrf.mxu1 }
 0x57c   :  { %v816_v18 = vrot.slane %v815_v44, 4  ;;  %v812_v9 = vadd.f32 %v811_v13, %v810_v24 }
 0x57e   :  { %v817_v15 = vadd.f32 %v816_v18, %v815_v44  ;;  %v813_v26 = vrot.slane %v812_v9, 1 }
 0x580   :  { %v818_v59 = vrot.slane %v817_v15, 2  ;;  %v814_v14 = vadd.f32 %v813_v26, %v812_v9 }
 0x582   :  { %v819_v11 = vadd.f32 %v818_v59, %v817_v15 }
 0x584   :  { %v820_v62 = vrot.slane %v819_v11, 1 }
 0x586   :  { %v821_v16 = vadd.f32 %v820_v62, %v819_v11 }
 0x588   :  { %v828_v19 = vsel %vm224_vm5, %v821_v16, %v814_v14 }
 0x589   :  { %1113 = vmatmul.mubr.msk.f32.vlgmr.msra.gmra.mxu0 %vm65_vm2, %v828_v19 }
 0x58a   :  { %1127 = vmatpush3.msra.mxu0 %v45_v17  ;;  %1130 = vmatprep.mubr.msk.f32.mxu0 %vm1227_vm10, %v1226_v27 }
 0x58b   :  { %1128 = vmatprep.subr.mxu0 %v1226_v27 }
 0x58c   :  { %1129 = vmatpush3.msra.mxu0 %v44_v23 }
 0x649   :  { %v897_v29 = vpop.f32.mrf.mxu0 }
 0x64a   :  { %v898_v30 = vadd.f32 %v1072_v28, %v897_v29 }
 0x64b   :  { %v1114_v31 = vpop.f32.mrf.mxu0 }
 0x64c   :  { %1131 = vmatmul.mubr.msk.f32.vlgmr.msra.gmra.mxu0 %vm974_vm14, %v898_v30 }
 0x70c   :  { %v1044_v27 = vpop.f32.mrf.mxu0 }
 0x70d   :  { %v1045_v33 = vadd.f32 %v1044_v27, %v970_v22 }
 0x70e   :  { %v1132_v34 = vpop.f32.mrf.mxu0 }
 0x70f   :  { %v1052_v35 = vadd.f32 %v1076_v47, %v1045_v33 }
 0x711   :  { %1054 = vst.msk [vmem:[#allocation5] sm:$0x3] %vm1053_vm15, %v1052_v35 }
 0x712   :  { %1209 = shalt.err (!%p1206_p9)
}
 0x713   :  { %1064 = dma.vmem_to_hbm [thread:$0]  %s1062_s30, 32, %s1523_s4, [#allocation4]  }
 0x714   :  { %1220 = dma.done.wait [#allocation4], 32  }
 0x715   :  { %1221 = vsyncadd [#allocation4], 4294967264 }
 0x716   :  { %1068 = vsyncpa [#allocation3], 1 }
 0x717   :  { %1069 = vsyncpa [#allocation4], 1 }

</bundles_post_ra>
